<compile_context>
chip_gen: v7x
topology: tpu7x:2x2x1
jax: 0.10.0
libtpu: 0.0.40
codegen_flags: <defaults>
</compile_context>

<pallas_src>
import functools
import math

import jax
import jax.numpy as jnp
from jax import lax
from jax.experimental import pallas as pl
from jax.experimental.pallas import tpu as pltpu

LANES = 128
DEFAULT_BLOCK_ROWS = 4096            # (4096, 128) f32 block = 2 MiB per buffer
INNER_ROWS = 512                     # rows per chunk inside the reduction loop
VMEM_LIMIT_BYTES = 48 * 1024 * 1024  # explicit scoped-VMEM limit (ok on v5e/v6e/v7x)
EPS = 1e-12


# ---------------- small static helpers ----------------

def _cdiv(a, b):
    return -(-a // b)


def _sublane_mult(dtype):
    """Minimum sublane multiple for the dtype (8 f32 / 16 bf16 / 32 int8)."""
    itemsize = jnp.dtype(dtype).itemsize
    return 8 * max(1, 4 // itemsize)


def _mult_for(dtypes):
    return max(_sublane_mult(dt) for dt in dtypes)


def _to_rows(x_flat, min_rows):
    """Flat 1D array -> (rows, 128) with rows >= min_rows.

    Free reshape whenever size % 128 == 0 and size >= min_rows * 128."""
    n = x_flat.shape[0]
    rows = max(_cdiv(n, LANES), min_rows)
    padded = rows * LANES
    if padded != n:
        # TODO(synk): ragged-lane / tiny inputs still pay one jnp.pad HBM copy;
        # could be folded into the kernel with a masked tail load/store.
        x_flat = jnp.pad(x_flat, (0, padded - n))
    return x_flat.reshape(rows, LANES)


def _pick_block_rows(rows, dtypes):
    """Largest lane-dense block <= rows (callers guarantee rows >= sublane mult)."""
    mult = _mult_for(dtypes)
    block = min(DEFAULT_BLOCK_ROWS, (rows // mult) * mult)
    if block > INNER_ROWS:
        block = (block // INNER_ROWS) * INNER_ROWS   # exact inner chunking
    return max(block, mult)


def _chunking(block_rows):
    if block_rows > INNER_ROWS:
        return INNER_ROWS, block_rows // INNER_ROWS
    return block_rows, 1


@functools.lru_cache(maxsize=1)
def _num_tensorcores():
    """Conservative TensorCores-per-chip query (1 on v5e/v6e, 2 on v7x)."""
    try:
        info = pltpu.get_tpu_info()
    except Exception:
        return 1
    for name in ("num_tensorcores", "tensorcores_per_chip", "num_cores",
                 "core_count", "cores_per_chip"):
        v = getattr(info, name, None)
        if isinstance(v, int) and 1 <= v <= 4:
            return v
    return 1


def _core_split():
    """Returns (ncores, CORE_PARALLEL) when a cross-core grid split is usable."""
    ncores = _num_tensorcores()
    sem = getattr(pltpu, "CORE_PARALLEL", None)
    if ncores > 1 and sem is not None:
        return ncores, sem
    return 1, None


# ---------------- shared in-kernel reduction helpers ----------------

def _accum_block(p_ref, t_ref, w_ref, *, pt_lead, w_lead, chunk, nchunks,
                 masked, row_base, valid_rows):
    """Sum of (p-t)^2 [*w] (and of w) over one block, chunked to bound vregs.

    Returns ((8,128) f32 sum, (8,128) f32 weight-sum or None)."""
    weighted = w_ref is not None
    zero = jnp.zeros((8, LANES), jnp.float32)

    def chunk_body(ci, carry):
        start = pl.multiple_of(ci * chunk, chunk)
        sl = (pl.ds(start, chunk), slice(None))
        p = p_ref[pt_lead + sl].astype(jnp.float32)
        t = t_ref[pt_lead + sl].astype(jnp.float32)
        d = p - t
        sq = d * d
        if weighted:
            w = w_ref[w_lead + sl].astype(jnp.float32)
            sq = sq * w
        if masked:
            row = row_base + start + lax.broadcasted_iota(
                jnp.int32, (chunk, LANES), 0)
            valid = row < valid_rows
            sq = jnp.where(valid, sq, 0.0)
            if weighted:
                w = jnp.where(valid, w, 0.0)
        if weighted:
            acc_s, acc_w = carry
            return (acc_s + sq.reshape(-1, 8, LANES).sum(axis=0),
                    acc_w + w.reshape(-1, 8, LANES).sum(axis=0))
        return carry + sq.reshape(-1, 8, LANES).sum(axis=0)

    if weighted:
        acc_s, acc_w = lax.fori_loop(0, nchunks, chunk_body, (zero, zero),
                                     unroll=True)
        return acc_s, acc_w
    acc_s = lax.fori_loop(0, nchunks, chunk_body, zero, unroll=True)
    return acc_s, None


def _dispatch_block(add, lb, row_blocks, *, need_mask, clamped):
    """Run add(masked): mask only the ragged tail block, skip clamped dups."""
    if need_mask:
        # Clamped duplicate blocks (lb >= row_blocks) fall in neither branch.
        pl.when(lb < row_blocks - 1)(lambda: add(False))
        pl.when(lb == row_blocks - 1)(lambda: add(True))
    elif clamped:
        pl.when(lb < row_blocks)(lambda: add(False))
    else:
        add(False)


# ---------------- Pallas kernels ----------------

def _sq_diff_kernel(p_ref, t_ref, o_ref):
    d = p_ref[...].astype(jnp.float32) - t_ref[...].astype(jnp.float32)
    o_ref[...] = (d * d).astype(o_ref.dtype)


def _sq_diff_w_kernel(p_ref, t_ref, w_ref, o_ref):
    d = p_ref[...].astype(jnp.float32) - t_ref[...].astype(jnp.float32)
    o_ref[...] = (d * d * w_ref[...].astype(jnp.float32)).astype(o_ref.dtype)


def _sq_diff_cw_kernel(p_ref, t_ref, w_ref, o_ref):
    # pred/target/out blocks: (1, 1, br, 128); compact weight block: (1, br, 128)
    d = p_ref[...].astype(jnp.float32) - t_ref[...].astype(jnp.float32)
    w = w_ref[...].astype(jnp.float32)[:, None]
    o_ref[...] = (d * d * w).astype(o_ref.dtype)


def _mse_sum_kernel(*refs, weighted, nsplit, inner, block_rows, row_blocks,
                    valid_rows, chunk, nchunks, need_mask):
    """Global reduction; grid = (row_blocks,) or (nsplit, inner) on multi-TC."""
    if weighted:
        p_ref, t_ref, w_ref, s_ref, ws_ref = refs
    else:
        p_ref, t_ref, s_ref = refs
        w_ref = ws_ref = None

    if nsplit > 1:
        lb = pl.program_id(0) * inner + pl.program_id(1)
        first = pl.program_id(1) == 0
        clamped = nsplit * inner > row_blocks
    else:
        lb = pl.program_id(0)
        first = lb == 0
        clamped = False

    @pl.when(first)
    def _():
        s_ref[...] = jnp.zeros_like(s_ref)
        if weighted:
            ws_ref[...] = jnp.zeros_like(ws_ref)

    def add(masked):
        acc_s, acc_w = _accum_block(
            p_ref, t_ref, w_ref, pt_lead=(), w_lead=(),
            chunk=chunk, nchunks=nchunks, masked=masked,
            row_base=lb * block_rows, valid_rows=valid_rows)
        s_ref[...] += acc_s
        if weighted:
            ws_ref[...] += acc_w

    _dispatch_block(add, lb, row_blocks, need_mask=need_mask, clamped=clamped)


def _mse_sum_sw_kernel(p_ref, t_ref, w_ref, s_ref, ws_ref, *, block_rows,
                       row_blocks, valid_rows, chunk, nchunks, need_mask):
    """Per-sample weighted sums; grid = (N, row_blocks)."""
    rb = pl.program_id(1)

    @pl.when(rb == 0)
    def _():
        s_ref[...] = jnp.zeros_like(s_ref)
        ws_ref[...] = jnp.zeros_like(ws_ref)

    def add(masked):
        acc_s, acc_w = _accum_block(
            p_ref, t_ref, w_ref, pt_lead=(0,), w_lead=(0,),
            chunk=chunk, nchunks=nchunks, masked=masked,
            row_base=rb * block_rows, valid_rows=valid_rows)
        s_ref[...] += acc_s[None]
        ws_ref[...] += acc_w[None]

    _dispatch_block(add, rb, row_blocks, need_mask=need_mask, clamped=False)


def _mse_sum_cw_kernel(p_ref, t_ref, w_ref, s_ref, ws_ref, *, block_rows,
                       row_blocks, valid_rows, chunk, nchunks, need_mask):
    """Per-sample sums with a compact channel-shared weight; grid = (N, C, rb)."""
    ci = pl.program_id(1)
    r = pl.program_id(2)

    @pl.when(jnp.logical_and(ci == 0, r == 0))
    def _():
        s_ref[...] = jnp.zeros_like(s_ref)
        ws_ref[...] = jnp.zeros_like(ws_ref)

    def add(masked):
        acc_s, acc_w = _accum_block(
            p_ref, t_ref, w_ref, pt_lead=(0, 0), w_lead=(0,),
            chunk=chunk, nchunks=nchunks, masked=masked,
            row_base=r * block_rows, valid_rows=valid_rows)
        s_ref[...] += acc_s[None]
        # weight accumulated once per channel step -> matches the expanded
        # NCHW weight sum that mmagic's denominator uses.
        ws_ref[...] += acc_w[None]

    _dispatch_block(add, r, row_blocks, need_mask=need_mask, clamped=False)


# ---------------- wrappers (glue: reshape + launch only) ----------------

def _elementwise_sq_diff(pred, target, weight=None):
    """(pred - target)**2 [* weight] with pred's shape/dtype (reduction='none')."""
    orig_shape, dtype = pred.shape, pred.dtype
    n = pred.size
    dtypes = [pred.dtype, target.dtype] + ([weight.dtype] if weight is not None else [])
    mult = _mult_for(dtypes)
    pf = _to_rows(pred.reshape(-1), mult)
    tf = _to_rows(target.reshape(-1), mult)
    rows = pf.shape[0]
    block_rows = _pick_block_rows(rows, dtypes)
    row_blocks = _cdiv(rows, block_rows)

    if weight is None:
        args, kernel = (pf, tf), _sq_diff_kernel
    else:
        args = (pf, tf, _to_rows(weight.reshape(-1), mult))
        kernel = _sq_diff_w_kernel

    ncores, core_sem = _core_split()
    if ncores > 1 and row_blocks % ncores == 0:
        inner = row_blocks // ncores
        grid = (ncores, inner)
        spec = pl.BlockSpec((block_rows, LANES),
                            lambda c, i, inner=inner: (c * inner + i, 0))
        sem = (core_sem, getattr(pltpu, "PARALLEL", "parallel"))
    else:
        grid = (row_blocks,)
        spec = pl.BlockSpec((block_rows, LANES), lambda i: (i, 0))
        sem = ("parallel",)

    out = pl.pallas_call(
        kernel,
        out_shape=jax.ShapeDtypeStruct((rows, LANES), dtype),
        grid=grid,
        in_specs=[spec] * len(args),
        out_specs=spec,
        compiler_params=pltpu.CompilerParams(
            dimension_semantics=sem, vmem_limit_bytes=VMEM_LIMIT_BYTES),
    )(*args)

    out_flat = out.reshape(-1)
    if out_flat.shape[0] != n:
        out_flat = out_flat[:n]
    return out_flat.reshape(orig_shape)


def _elementwise_sq_diff_compact(pred, target, weight):
    """(pred-target)^2 * compact (N,1,H,W) weight (reduction='none'), weight kept compact."""
    n, c = pred.shape[0], pred.shape[1]
    hw = pred.size // (n * c)
    hw_rows = hw // LANES
    dtypes = [pred.dtype, target.dtype, weight.dtype]
    p4 = pred.reshape(n, c, hw_rows, LANES)
    t4 = target.reshape(n, c, hw_rows, LANES)
    w3 = weight.reshape(n, hw_rows, LANES)
    block_rows = _pick_block_rows(hw_rows, dtypes)
    row_blocks = _cdiv(hw_rows, block_rows)

    pt_spec = pl.BlockSpec((1, 1, block_rows, LANES), lambda b, ci, r: (b, ci, r, 0))
    w_spec = pl.BlockSpec((1, block_rows, LANES), lambda b, ci, r: (b, r, 0))
    out = pl.pallas_call(
        _sq_diff_cw_kernel,
        out_shape=jax.ShapeDtypeStruct((n, c, hw_rows, LANES), pred.dtype),
        grid=(n, c, row_blocks),
        in_specs=[pt_spec, pt_spec, w_spec],
        out_specs=pt_spec,
        compiler_params=pltpu.CompilerParams(
            dimension_semantics=("parallel", "parallel", "parallel"),
            vmem_limit_bytes=VMEM_LIMIT_BYTES),
    )(p4, t4, w3)
    return out.reshape(pred.shape)


def _sum_sq_diff(pred_flat, target_flat, weight_flat=None):
    """Global (sum((p-t)^2 [*w]), sum(w) or None) as f32 scalars."""
    weighted = weight_flat is not None
    dtypes = [pred_flat.dtype, target_flat.dtype] + ([weight_flat.dtype] if weighted else [])
    mult = _mult_for(dtypes)
    pf = _to_rows(pred_flat, mult)
    tf = _to_rows(target_flat, mult)
    rows = pf.shape[0]
    block_rows = _pick_block_rows(rows, dtypes)
    row_blocks = _cdiv(rows, block_rows)
    chunk, nchunks = _chunking(block_rows)
    need_mask = (rows % block_rows) != 0

    ncores, core_sem = _core_split()
    nsplit = ncores if (ncores > 1 and row_blocks >= ncores) else 1

    if nsplit > 1:
        inner = _cdiv(row_blocks, nsplit)
        grid = (nsplit, inner)
        # Clamp duplicate trailing blocks; the kernel skips them entirely.
        in_spec = pl.BlockSpec(
            (block_rows, LANES),
            lambda c, i, inner=inner: (jnp.minimum(c * inner + i, row_blocks - 1), 0))
        out_spec = pl.BlockSpec((8, LANES), lambda c, i: (c, 0))
        out_rows = nsplit * 8
        sem = (core_sem, getattr(pltpu, "ARBITRARY", "arbitrary"))
    else:
        inner = 1
        grid = (row_blocks,)
        in_spec = pl.BlockSpec((block_rows, LANES), lambda i: (i, 0))
        out_spec = pl.BlockSpec((8, LANES), lambda i: (0, 0))
        out_rows = 8
        sem = ("arbitrary",)

    kern = functools.partial(
        _mse_sum_kernel, weighted=weighted, nsplit=nsplit, inner=inner,
        block_rows=block_rows, row_blocks=row_blocks, valid_rows=rows,
        chunk=chunk, nchunks=nchunks, need_mask=need_mask)
    out_struct = jax.ShapeDtypeStruct((out_rows, LANES), jnp.float32)
    cparams = pltpu.CompilerParams(
        dimension_semantics=sem, vmem_limit_bytes=VMEM_LIMIT_BYTES)

    if not weighted:
        s = pl.pallas_call(
            kern, out_shape=out_struct, grid=grid,
            in_specs=[in_spec, in_spec], out_specs=out_spec,
            compiler_params=cparams)(pf, tf)
        return jnp.sum(s), None

    wf = _to_rows(weight_flat, mult)
    s, ws = pl.pallas_call(
        kern, out_shape=(out_struct, out_struct), grid=grid,
        in_specs=[in_spec, in_spec, in_spec], out_specs=(out_spec, out_spec),
        compiler_params=cparams)(pf, tf, wf)
    return jnp.sum(s), jnp.sum(ws)


def _sum_sq_diff_samplewise(pred, target, weight):
    """Per-sample (sum((p-t)^2*w), sum(w)) -> two (N,) f32 arrays (full weight)."""
    n = pred.shape[0]
    per = pred.size // n
    dtypes = [pred.dtype, target.dtype, weight.dtype]
    mult = _mult_for(dtypes)
    rows = max(_cdiv(per, LANES), mult)
    padded = rows * LANES
    p2 = pred.reshape(n, per)
    t2 = target.reshape(n, per)
    w2 = weight.reshape(n, per)
    if padded != per:
        # TODO(synk): ragged-lane samplewise path still pays one jnp.pad HBM copy per input.
        pad = ((0, 0), (0, padded - per))
        p2, t2, w2 = jnp.pad(p2, pad), jnp.pad(t2, pad), jnp.pad(w2, pad)
    p3 = p2.reshape(n, rows, LANES)
    t3 = t2.reshape(n, rows, LANES)
    w3 = w2.reshape(n, rows, LANES)

    block_rows = _pick_block_rows(rows, dtypes)
    row_blocks = _cdiv(rows, block_rows)
    chunk, nchunks = _chunking(block_rows)
    need_mask = (rows % block_rows) != 0

    in_spec = pl.BlockSpec((1, block_rows, LANES), lambda b, r: (b, r, 0))
    out_spec = pl.BlockSpec((1, 8, LANES), lambda b, r: (b, 0, 0))
    kern = functools.partial(
        _mse_sum_sw_kernel, block_rows=block_rows, row_blocks=row_blocks,
        valid_rows=rows, chunk=chunk, nchunks=nchunks, need_mask=need_mask)
    # TODO(synk): could additionally CORE_PARALLEL-split the N axis on v7x when N % ncores == 0.
    s, ws = pl.pallas_call(
        kern,
        out_shape=(jax.ShapeDtypeStruct((n, 8, LANES), jnp.float32),) * 2,
        grid=(n, row_blocks),
        in_specs=[in_spec] * 3,
        out_specs=(out_spec, out_spec),
        compiler_params=pltpu.CompilerParams(
            dimension_semantics=("parallel", "arbitrary"),
            vmem_limit_bytes=VMEM_LIMIT_BYTES),
    )(p3, t3, w3)
    return jnp.sum(s, axis=(1, 2)), jnp.sum(ws, axis=(1, 2))


def _sum_sq_diff_compact(pred, target, weight):
    """Per-sample (sum((p-t)^2*w_bcast), sum(w_bcast)) with a compact (N,1,H,W)
    weight kept compact in HBM; the weight BlockSpec ignores the channel grid
    coordinate so the same tile is re-read per channel instead of
    materializing an NCHW broadcast."""
    n, c = pred.shape[0], pred.shape[1]
    hw = pred.size // (n * c)
    hw_rows = hw // LANES  # caller guarantees hw % 128 == 0 and hw_rows >= sublane mult
    dtypes = [pred.dtype, target.dtype, weight.dtype]
    p4 = pred.reshape(n, c, hw_rows, LANES)
    t4 = target.reshape(n, c, hw_rows, LANES)
    w3 = weight.reshape(n, hw_rows, LANES)

    block_rows = _pick_block_rows(hw_rows, dtypes)
    row_blocks = _cdiv(hw_rows, block_rows)
    chunk, nchunks = _chunking(block_rows)
    need_mask = (hw_rows % block_rows) != 0

    pt_spec = pl.BlockSpec((1, 1, block_rows, LANES), lambda b, ci, r: (b, ci, r, 0))
    w_spec = pl.BlockSpec((1, block_rows, LANES), lambda b, ci, r: (b, r, 0))
    out_spec = pl.BlockSpec((1, 8, LANES), lambda b, ci, r: (b, 0, 0))
    kern = functools.partial(
        _mse_sum_cw_kernel, block_rows=block_rows, row_blocks=row_blocks,
        valid_rows=hw_rows, chunk=chunk, nchunks=nchunks, need_mask=need_mask)
    s, ws = pl.pallas_call(
        kern,
        out_shape=(jax.ShapeDtypeStruct((n, 8, LANES), jnp.float32),) * 2,
        grid=(n, c, row_blocks),
        in_specs=[pt_spec, pt_spec, w_spec],
        out_specs=(out_spec, out_spec),
        compiler_params=pltpu.CompilerParams(
            dimension_semantics=("parallel", "arbitrary", "arbitrary"),
            vmem_limit_bytes=VMEM_LIMIT_BYTES),
    )(p4, t4, w3)
    return jnp.sum(s, axis=(1, 2)), jnp.sum(ws, axis=(1, 2))


class MSELoss:
    """Pallas-backed equivalent of mmagic's MSELoss (masked_loss semantics)."""

    def __init__(self, loss_weight=1.0, reduction='mean', sample_wise=False):
        if reduction not in ('none', 'mean', 'sum'):
            raise ValueError(f'Unsupported reduction mode: {reduction}.')
        self.loss_weight = loss_weight
        self.reduction = reduction
        self.sample_wise = sample_wise

    def __call__(self, pred, target, weight=None):
        compact = (weight is not None and weight.ndim == pred.ndim
                   and pred.ndim >= 3 and weight.shape[1] == 1
                   and pred.shape[1] != 1)
        if compact:
            hw = math.prod(pred.shape[2:])
            mult = _mult_for([pred.dtype, target.dtype, weight.dtype])
            if hw % LANES != 0 or (hw // LANES) < mult:
                # TODO(synk): ragged / tiny spatial extents fall back to one HBM
                # broadcast copy of the compact weight.
                weight = jnp.broadcast_to(weight, pred.shape)
                compact = False

        if self.reduction == 'none':
            if weight is None:
                loss = _elementwise_sq_diff(pred, target)
            elif compact:
                loss = _elementwise_sq_diff_compact(pred, target, weight)
            else:
                loss = _elementwise_sq_diff(pred, target, weight)
            return self.loss_weight * loss

        if weight is None:
            s, _ = _sum_sq_diff(pred.reshape(-1), target.reshape(-1))
            loss = s / pred.size if self.reduction == 'mean' else s
            return self.loss_weight * loss

        # weighted 'sum' / 'mean'
        if compact:
            s_per, ws_per = _sum_sq_diff_compact(pred, target, weight)
            if self.reduction == 'sum':
                loss = jnp.sum(s_per)
            elif self.sample_wise:
                loss = jnp.mean(s_per / (ws_per + EPS))
            else:
                # matches mmagic: loss.sum() / (weight + eps).sum(), expanded weight
                loss = jnp.sum(s_per) / (jnp.sum(ws_per) + EPS * pred.size)
            return self.loss_weight * loss

        if self.reduction == 'sum':
            s, _ = _sum_sq_diff(pred.reshape(-1), target.reshape(-1),
                                weight.reshape(-1))
            return self.loss_weight * s
        if self.sample_wise:
            s_per, ws_per = _sum_sq_diff_samplewise(pred, target, weight)
            return self.loss_weight * jnp.mean(s_per / (ws_per + EPS))
        s, ws = _sum_sq_diff(pred.reshape(-1), target.reshape(-1),
                             weight.reshape(-1))
        # matches mmagic: loss.sum() / (weight + eps).sum()
        return self.loss_weight * (s / (ws + EPS * pred.size))


if __name__ == "__main__":
    key = jax.random.PRNGKey(0)
    k1, k2, k3 = jax.random.split(key, 3)
    N, C, H, W = 2, 4, 16, 16
    pred = jax.random.normal(k1, (N, C, H, W), dtype=jnp.float32)
    target = jax.random.normal(k2, (N, C, H, W), dtype=jnp.float32)
    weight = (jax.random.uniform(k3, (N, C, H, W), dtype=jnp.float32) > 0.5
              ).astype(jnp.float32)

    # default: reduction='mean', weight=None
    loss_mean = MSELoss(loss_weight=1.0, reduction='mean')(pred, target)
    jax.block_until_ready(loss_mean)
    assert jnp.allclose(loss_mean, jnp.mean((pred - target) ** 2),
                        rtol=1e-5, atol=1e-6)

    # reduction='sum'
    loss_sum = MSELoss(reduction='sum')(pred, target)
    jax.block_until_ready(loss_sum)
    assert jnp.allclose(loss_sum, jnp.sum((pred - target) ** 2),
                        rtol=1e-5, atol=1e-4)

    # reduction='none'
    loss_none = MSELoss(reduction='none')(pred, target)
    jax.block_until_ready(loss_none)
    assert loss_none.shape == pred.shape
    assert jnp.allclose(loss_none, (pred - target) ** 2, rtol=1e-5, atol=1e-6)

    # weighted mean (masked), sample_wise False and True (full elementwise weight)
    loss_wm = MSELoss(reduction='mean')(pred, target, weight)
    jax.block_until_ready(loss_wm)
    ref_wm = jnp.sum((pred - target) ** 2 * weight) / jnp.sum(weight + EPS)
    assert jnp.allclose(loss_wm, ref_wm, rtol=1e-5, atol=1e-6)

    loss_sw = MSELoss(reduction='mean', sample_wise=True)(pred, target, weight)
    jax.block_until_ready(loss_sw)
    wsum = jnp.sum(weight, axis=(1, 2, 3))
    ref_sw = jnp.mean(jnp.sum((pred - target) ** 2 * weight, axis=(1, 2, 3))
                      / (wsum + EPS))
    assert jnp.allclose(loss_sw, ref_sw, rtol=1e-5, atol=1e-6)

    # weighted sum
    loss_wsum = MSELoss(reduction='sum')(pred, target, weight)
    jax.block_until_ready(loss_wsum)
    assert jnp.allclose(loss_wsum, jnp.sum((pred - target) ** 2 * weight),
                        rtol=1e-5, atol=1e-4)

    # compact (N,1,H,W) weight kept compact in HBM (H*W large enough for the view)
    Hc = Wc = 32
    pc = jax.random.normal(k1, (N, C, Hc, Wc), dtype=jnp.float32)
    tc = jax.random.normal(k2, (N, C, Hc, Wc), dtype=jnp.float32)
    wc = (jax.random.uniform(k3, (N, 1, Hc, Wc), dtype=jnp.float32) > 0.5
          ).astype(jnp.float32)
    wc_full = jnp.broadcast_to(wc, pc.shape)

    l_cm = MSELoss(reduction='mean')(pc, tc, wc)
    jax.block_until_ready(l_cm)
    ref_cm = jnp.sum((pc - tc) ** 2 * wc_full) / jnp.sum(wc_full + EPS)
    assert jnp.allclose(l_cm, ref_cm, rtol=1e-5, atol=1e-6)

    l_csw = MSELoss(reduction='mean', sample_wise=True)(pc, tc, wc)
    jax.block_until_ready(l_csw)
    wcs = jnp.sum(wc_full, axis=(1, 2, 3))
    ref_csw = jnp.mean(jnp.sum((pc - tc) ** 2 * wc_full, axis=(1, 2, 3))
                       / (wcs + EPS))
    assert jnp.allclose(l_csw, ref_csw, rtol=1e-5, atol=1e-6)

    l_cn = MSELoss(reduction='none')(pc, tc, wc)
    jax.block_until_ready(l_cn)
    assert jnp.allclose(l_cn, (pc - tc) ** 2 * wc_full, rtol=1e-5, atol=1e-6)

    # ragged-row case (exercises tail-only in-kernel masking, no HBM pad copies)
    pr = jax.random.normal(k1, (3, 3, 13, 128), dtype=jnp.float32)
    tr = jax.random.normal(k2, (3, 3, 13, 128), dtype=jnp.float32)
    lr = MSELoss(reduction='mean')(pr, tr)
    jax.block_until_ready(lr)
    assert jnp.allclose(lr, jnp.mean((pr - tr) ** 2), rtol=1e-5, atol=1e-6)

    # ragged-lane case (size % 128 != 0 -> zero-pad fallback)
    ps = jax.random.normal(k1, (2, 3, 5, 7), dtype=jnp.float32)
    ts = jax.random.normal(k2, (2, 3, 5, 7), dtype=jnp.float32)
    ls = MSELoss(reduction='mean')(ps, ts)
    jax.block_until_ready(ls)
    assert jnp.allclose(ls, jnp.mean((ps - ts) ** 2), rtol=1e-5, atol=1e-6)
    ln = MSELoss(reduction='none')(ps, ts)
    jax.block_until_ready(ln)
    assert ln.shape == ps.shape
    assert jnp.allclose(ln, (ps - ts) ** 2, rtol=1e-5, atol=1e-6)

    print("KERNEL_OK")
</pallas_src>

<mosaic_0001>
module attributes {stable_mosaic.version = 11 : i64} {
  func.func @_mse_sum_kernel(%arg0: i32, %arg1: memref<16x128xf32, #tpu.memory_space<vmem>>, %arg2: memref<16x128xf32, #tpu.memory_space<vmem>>, %arg3: memref<8x128xf32, #tpu.memory_space<vmem>>) attributes {dimension_semantics = [#tpu.dimension_semantics<arbitrary>], iteration_bounds = array<i64: 1>, scalar_prefetch = 0 : i64, scratch_operands = 0 : i64, tpu.core_type = #tpu.core_type<tc>, window_params = [{transform_indices = @transform_0, window_bounds = array<i64: 16, 128>}, {transform_indices = @transform_1, window_bounds = array<i64: 16, 128>}, {pipeline_mode = #tpu.pipeline_mode<synchronous>, transform_indices = @transform_2, window_bounds = array<i64: 8, 128>}]} {
    %c0_i32 = arith.constant 0 : i32
    %0 = arith.cmpi eq, %arg0, %c0_i32 : i32
    %1 = arith.extui %0 : i1 to i32
    %c0_i32_0 = arith.constant 0 : i32
    %2 = arith.cmpi ne, %1, %c0_i32_0 : i32
    scf.if %2 {
      %cst_8 = arith.constant 0.000000e+00 : f32
      %18 = vector.broadcast %cst_8 : f32 to vector<8x128xf32>
      %c0_9 = arith.constant 0 : index
      %c0_10 = arith.constant 0 : index
      %19 = vector.load %arg3[%c0_9, %c0_10] : memref<8x128xf32, #tpu.memory_space<vmem>>, vector<8x128xf32>
      tpu.vector_store %arg3[%c0_9, %c0_10], %18 {strides = array<i32>} : memref<8x128xf32, #tpu.memory_space<vmem>>, vector<8x128xf32>,
    } else {
    }
    %cst = arith.constant 0.000000e+00 : f32
    %3 = vector.broadcast %cst : f32 to vector<8x128xf32>
    %c0_i32_1 = arith.constant 0 : i32
    %c16_i32 = arith.constant 16 : i32
    %4 = arith.muli %c0_i32_1, %c16_i32 : i32
    %5 = tpu.assume_multiple %4, 16 : i32
    %6 = arith.index_cast %5 : i32 to index
    %c0 = arith.constant 0 : index
    %7 = vector.load %arg1[%6, %c0] : memref<16x128xf32, #tpu.memory_space<vmem>>, vector<16x128xf32>
    %8 = arith.index_cast %5 : i32 to index
    %c0_2 = arith.constant 0 : index
    %9 = vector.load %arg2[%8, %c0_2] : memref<16x128xf32, #tpu.memory_space<vmem>>, vector<16x128xf32>
    %10 = arith.subf %7, %9 : vector<16x128xf32>
    %11 = arith.mulf %10, %10 : vector<16x128xf32>
    %12 = vector.shape_cast %11 : vector<16x128xf32> to vector<2x8x128xf32>
    %cst_3 = arith.constant dense<0.000000e+00> : vector<8x128xf32>
    %13 = vector.multi_reduction <add>, %12, %cst_3 [0] : vector<2x8x128xf32> to vector<8x128xf32>
    %14 = arith.addf %3, %13 : vector<8x128xf32>
    %c1_i32 = arith.constant 1 : i32
    %c0_4 = arith.constant 0 : index
    %c0_5 = arith.constant 0 : index
    %15 = vector.load %arg3[%c0_4, %c0_5] : memref<8x128xf32, #tpu.memory_space<vmem>>, vector<8x128xf32>
    %16 = arith.addf %15, %14 : vector<8x128xf32>
    %c0_6 = arith.constant 0 : index
    %c0_7 = arith.constant 0 : index
    %17 = vector.load %arg3[%c0_6, %c0_7] : memref<8x128xf32, #tpu.memory_space<vmem>>, vector<8x128xf32>
    tpu.vector_store %arg3[%c0_6, %c0_7], %16 {strides = array<i32>} : memref<8x128xf32, #tpu.memory_space<vmem>>, vector<8x128xf32>,
    return
  }
  func.func @transform_0(%arg0: i32) -> (i32, i32) {
    %c0_i32 = arith.constant 0 : i32
    %c0_i32_0 = arith.constant 0 : i32
    return %arg0, %c0_i32 : i32, i32
  }
  func.func @transform_1(%arg0: i32) -> (i32, i32) {
    %c0_i32 = arith.constant 0 : i32
    %c0_i32_0 = arith.constant 0 : i32
    return %arg0, %c0_i32 : i32, i32
  }
  func.func @transform_2(%arg0: i32) -> (i32, i32) {
    %c0_i32 = arith.constant 0 : i32
    %c0_i32_0 = arith.constant 0 : i32
    %c0_i32_1 = arith.constant 0 : i32
    return %c0_i32, %c0_i32_0 : i32, i32
  }
}

</mosaic_0001>

<bundles_post_ra>
// kernel: tpu_custom_call.1
= control target key start
LH: loop header
LB: loop body
LE: loop exit
PB: predicated region body
PF: predicated region fallthrough
CT: control target
= control target key end

     0   :  { %7 = vsyncpa [#allocation3], 0  ;;  %s208_s0 = inlined_call_operand.hbm [shape: f32[16,128], index: 0, kind: input, shape index: {}]   ;;  %s209_s1 = inlined_call_operand.hbm [shape: f32[16,128], index: 1, kind: input, shape index: {}]   ;;  %s210_s2 = inlined_call_operand.hbm [shape: f32[8,128], index: 2, kind: output, shape index: {}]  }
   0x1   :  { %8 = vsyncpa [#allocation6], 0 }
   0x2   :  { %9 = vsyncpa [#allocation4], 0  ;;  %s152_s9 = smov [#allocation2]   ;;  %s80_s13 = scalar_lea.hbm %s208_s0, 256 }
   0x3   :  { %s15_s10 = sshll.u32 %s152_s9, 4  ;;  %p81_p0 = scmp.ne.s32.totalorder %s208_s0, %s80_s13  ;;  %s16_s10 = int_to_ptr.vmem [resolvable:$true] %s15_s10 }
   0x4   :  { %p84_p1 = scmp.lt.u32.totalorder %s80_s13, %s208_s0 }
   0x6   :  { %p86_p2 = pnand %p84_p1, %p81_p0 }
   0x8   :  { %89 = shalt.err (!%p86_p2)
}
   0x9   :  { %s90_s18 = scalar_lea.vmem %s16_s10, 256  ;;  %p95_p4 = scmp.lt.s32.totalorder %s16_s10, %s16_s10 }
   0xa   :  { %p91_p3 = scmp.ne.s32.totalorder %s16_s10, %s90_s18  ;;  %p96_p5 = scmp.lt.s32.totalorder %s90_s18, %s90_s18 }
   0xc   :  { %p97_p6 = por %p96_p5, %p95_p4 }
   0xe   :  { %p98_p7 = pnand %p97_p6, %p91_p3 }
  0x10   :  { %101 = shalt.err (!%p98_p7)
}
  0x11   :  { %s153_s19 = smov 128   ;;  %s154_s20 = smov 8  }
  0x12   :  { %21 = dma.hbm_to_vmem [thread:$0]  %s208_s0, 256, %s16_s10, [#allocation3], %s153_s19, %s153_s19, %s154_s20  }
  0x13   :  { %s155_s23 = smov [#allocation5]   ;;  %s102_s27 = scalar_lea.hbm %s209_s1, 256 }
  0x14   :  { %s27_s24 = sshll.u32 %s155_s23, 4  ;;  %p103_p8 = scmp.ne.s32.totalorder %s209_s1, %s102_s27  ;;  %s28_s24 = int_to_ptr.vmem [resolvable:$true] %s27_s24 }
  0x15   :  { %p106_p9 = scmp.lt.u32.totalorder %s102_s27, %s209_s1 }
  0x17   :  { %p108_p10 = pnand %p106_p9, %p103_p8 }
  0x19   :  { %111 = shalt.err (!%p108_p10)
}
  0x1a   :  { %s112_s4 = scalar_lea.vmem %s28_s24, 256  ;;  %p117_p12 = scmp.lt.s32.totalorder %s28_s24, %s28_s24 }
  0x1b   :  { %p113_p11 = scmp.ne.s32.totalorder %s28_s24, %s112_s4  ;;  %p118_p13 = scmp.lt.s32.totalorder %s112_s4, %s112_s4 }
  0x1d   :  { %p119_p0 = por %p118_p13, %p117_p12 }
  0x1f   :  { %p120_p1 = pnand %p119_p0, %p113_p11 }
  0x21   :  { %123 = shalt.err (!%p120_p1)
}
  0x22   :  { %33 = dma.hbm_to_vmem [thread:$0]  %s209_s1, 256, %s28_s24, [#allocation6], %s153_s19, %s153_s19, %s154_s20  }
  0x23   :  { %146 = dma.done.wait [#allocation3], 256  }
  0x24   :  { %147 = vsyncadd [#allocation3], 4294967040 }
  0x25   :  { %148 = dma.done.wait [#allocation6], 256  }
  0x26   :  { %149 = vsyncadd [#allocation6], 4294967040  ;;  %v45_v0 = vld [vmem:[#allocation2] sm:$0xff]  ;;  %v46_v1 = vld [vmem:[#allocation2 + $0x8] sm:$0xff]  ;;  %s156_s6 = smov [#allocation7]  }
  0x27   :  { %v47_v2 = vld [vmem:[#allocation5] sm:$0xff]  ;;  %v48_v3 = vld [vmem:[#allocation5 + $0x8] sm:$0xff]  ;;  %s64_s7 = sshll.u32 %s156_s6, 4  ;;  %s65_s7 = int_to_ptr.vmem [resolvable:$true] %s64_s7 }
  0x28   :  { %v49_v4 = vsub.f32 %v45_v0, %v47_v2  ;;  %v50_v5 = vsub.f32 %v46_v1, %v48_v3  ;;  %s124_s8 = scalar_lea.vmem %s65_s7, 128  ;;  %p129_p3 = scmp.lt.s32.totalorder %s65_s7, %s65_s7 }
  0x29   :  { %p125_p2 = scmp.ne.s32.totalorder %s65_s7, %s124_s8  ;;  %p130_p4 = scmp.lt.s32.totalorder %s124_s8, %s124_s8 }
  0x2a   :  { %v51_v6 = vmul.f32 %v49_v4, %v49_v4  ;;  %v52_v7 = vmul.f32 %v50_v5, %v50_v5 }
  0x2b   :  { %p131_p5 = por %p130_p4, %p129_p3 }
  0x2c   :  { %v53_v8 = vadd.f32 %v52_v7, %v51_v6 }
  0x2d   :  { %p132_p6 = pnand %p131_p5, %p125_p2 }
  0x2e   :  { %57 = vst [vmem:[#allocation7] sm:$0xff] %v53_v8 }
  0x2f   :  { %135 = shalt.err (!%p132_p6)
}
  0x30   :  { %s136_s10 = scalar_lea.hbm %s210_s2, 128 }
  0x31   :  { %p137_p7 = scmp.ne.s32.totalorder %s210_s2, %s136_s10  ;;  %p140_p8 = scmp.lt.u32.totalorder %s136_s10, %s210_s2 }
  0x33   :  { %p142_p9 = pnand %p140_p8, %p137_p7 }
  0x35   :  { %145 = shalt.err (!%p142_p9)
}
  0x36   :  { %67 = dma.vmem_to_hbm [thread:$0]  %s65_s7, 128, %s210_s2, [#allocation4]  }
  0x37   :  { %150 = dma.done.wait [#allocation4], 128  }
  0x38   :  { %151 = vsyncadd [#allocation4], 4294967168 }
  0x39   :  { %71 = vsyncpa [#allocation3], 1 }
  0x3a   :  { %72 = vsyncpa [#allocation6], 1 }
  0x3b   :  { %73 = vsyncpa [#allocation4], 1 }

</bundles_post_ra>
